<compile_context>
chip_gen: v7x
topology: tpu7x:2x2x1
jax: 0.10.0
libtpu: 0.0.40
codegen_flags: <defaults>
</compile_context>

<pallas_src>
import functools

import jax
import jax.numpy as jnp
from jax.experimental import pallas as pl
from jax.experimental.pallas import tpu as pltpu


def _identity_kernel(x_ref, o_ref):
    # Pure pass-through: load the full VMEM tile and store it unchanged.
    o_ref[...] = x_ref[...]


_TARGET_BLOCK_BYTES = 2 * 1024 * 1024  # ~2 MiB blocks: >=85% of measured HBM roofline.


@functools.partial(jax.jit, static_argnames=("donate_input",))
def identity(x: jax.Array, donate_input: bool = False) -> jax.Array:
    """Identity forward pass (explicit Pallas copy): returns x unchanged."""
    orig_shape = x.shape
    n = x.size
    if n == 0:
        return x

    itemsize = x.dtype.itemsize

    # Pick the widest lane count that divides the element count exactly so the
    # reshape is free (no pad, no trailing slice) and stores are lane-dense.
    lanes = None
    for cand in (1024, 512, 256, 128):
        if n % cand == 0:
            lanes = cand
            break

    if lanes is None:
        # TODO(synk): sizes not divisible by 128 fall back to a pad+slice path
        # (two extra HBM passes). Never hit by NCHW conv activations.
        lanes = 128
        rows = pl.cdiv(n, lanes)
        pad = rows * lanes - n
        x2d = jnp.pad(x.reshape(-1), (0, pad)).reshape(rows, lanes)
        padded = True
    else:
        rows = n // lanes
        x2d = x.reshape(rows, lanes)
        padded = False

    # Block sizing: ~2 MiB per block, rows a multiple of 8 (lane dim is already a
    # multiple of 128). Small arrays get a single full-array block (allowed by the
    # (8,128) rule and wastes no padded DMA traffic). Large arrays get >=2 grid
    # steps, which lets the "parallel" axis shard across both v7x TensorCores.
    bytes_per_row = lanes * itemsize
    target_rows = max(8, (_TARGET_BLOCK_BYTES // bytes_per_row) // 8 * 8)
    tile_rows = rows if rows <= target_rows else int(target_rows)
    grid = (pl.cdiv(rows, tile_rows),)

    extra_kwargs = {}
    if donate_input:
        # Input and output share shape/dtype; when the caller donates x this lets
        # XLA elide the second HBM buffer entirely (in-place copy).
        extra_kwargs["input_output_aliases"] = {0: 0}

    out = pl.pallas_call(
        _identity_kernel,
        out_shape=jax.ShapeDtypeStruct((rows, lanes), x2d.dtype),
        grid_spec=pltpu.PrefetchScalarGridSpec(
            num_scalar_prefetch=0,
            grid=grid,
            in_specs=[pl.BlockSpec((tile_rows, lanes), lambda i: (i, 0))],
            out_specs=pl.BlockSpec((tile_rows, lanes), lambda i: (i, 0)),
        ),
        compiler_params=pltpu.CompilerParams(
            dimension_semantics=("parallel",),
            # 2 MiB block x 2 operands x 2 pipeline buffers = ~8 MiB; 32 MiB cap is
            # safe on v5e/v6e (128 MiB physical) and v7x (64 MiB physical).
            vmem_limit_bytes=32 * 1024 * 1024,
        ),
        **extra_kwargs,
    )(x2d)

    if padded:
        out = out.reshape(-1)[:n]
    return out.reshape(orig_shape)


if __name__ == "__main__":
    key = jax.random.PRNGKey(0)
    # Small NCHW input consistent with an AllCNN-style conv net.
    x = jax.random.normal(key, (2, 4, 16, 16), dtype=jnp.float32)

    y = identity(x)
    jax.block_until_ready(y)
    assert y.shape == x.shape and y.dtype == x.dtype
    assert bool(jnp.all(y == x))

    # Exercise the aliased (donation-friendly) path as well; x remains valid here
    # because it is not actually donated at the jit boundary (XLA copies first).
    y2 = identity(x, donate_input=True)
    jax.block_until_ready(y2)
    assert bool(jnp.all(y2 == x))

    print("KERNEL_OK")
</pallas_src>

<mosaic_0001>
module attributes {stable_mosaic.version = 11 : i64} {
  func.func @_identity_kernel(%arg0: i32, %arg1: memref<2x1024xf32, #tpu.memory_space<vmem>>, %arg2: memref<2x1024xf32, #tpu.memory_space<vmem>>) attributes {dimension_semantics = [#tpu.dimension_semantics<parallel>], iteration_bounds = array<i64: 1>, scalar_prefetch = 0 : i64, scratch_operands = 0 : i64, tpu.core_type = #tpu.core_type<tc>, window_params = [{transform_indices = @transform_0, window_bounds = array<i64: 2, 1024>}, {transform_indices = @transform_1, window_bounds = array<i64: 2, 1024>}]} {
    %c0 = arith.constant 0 : index
    %c0_0 = arith.constant 0 : index
    %0 = vector.load %arg1[%c0, %c0_0] : memref<2x1024xf32, #tpu.memory_space<vmem>>, vector<2x1024xf32>
    %c0_1 = arith.constant 0 : index
    %c0_2 = arith.constant 0 : index
    %1 = vector.load %arg2[%c0_1, %c0_2] : memref<2x1024xf32, #tpu.memory_space<vmem>>, vector<2x1024xf32>
    tpu.vector_store %arg2[%c0_1, %c0_2], %0 {strides = array<i32>} : memref<2x1024xf32, #tpu.memory_space<vmem>>, vector<2x1024xf32>,
    return
  }
  func.func @transform_0(%arg0: i32) -> (i32, i32) {
    %c0_i32 = arith.constant 0 : i32
    %c0_i32_0 = arith.constant 0 : i32
    return %arg0, %c0_i32 : i32, i32
  }
  func.func @transform_1(%arg0: i32) -> (i32, i32) {
    %c0_i32 = arith.constant 0 : i32
    %c0_i32_0 = arith.constant 0 : i32
    return %arg0, %c0_i32 : i32, i32
  }
}

</mosaic_0001>

<bundles_post_ra>
// kernel: identity.1
= control target key start
LH: loop header
LB: loop body
LE: loop exit
PB: predicated region body
PF: predicated region fallthrough
CT: control target
= control target key end

     0   :  { %s38_s0 = inlined_call_operand.vmem [shape: f32[2,1024], index: 0, kind: input, shape index: {}]   ;;  %s39_s1 = inlined_call_operand.vmem [shape: f32[2,1024], index: 1, kind: output, shape index: {}]  }
   0x1   :  { %v8_v0 = vld [vmem:[%s38_s0] sm:$0xff]  ;;  %v9_v1 = vld [vmem:[%s38_s0 + $0x8] sm:$0xff] }
   0x2   :  { %10 = vst [vmem:[%s39_s1] sm:$0xff] %v8_v0  ;;  %11 = vst [vmem:[%s39_s1 + $0x8] sm:$0xff] %v9_v1 }

</bundles_post_ra>
